<compile_context>
chip_gen: v6e
topology: v6e:2x2x1
jax: 0.10.0
libtpu: 0.0.40
codegen_flags: <defaults>
</compile_context>

<pallas_src>
import functools

import jax
import jax.numpy as jnp
from jax.experimental import pallas as pl
from jax.experimental.pallas import tpu as pltpu


MASK_VALUE = -1e30


def _round_up(x, m):
    return ((x + m - 1) // m) * m


def _largest_aligned_divisor(n, cap, align):
    """Largest t <= cap with n % t == 0 and t % align == 0 (n % align == 0)."""
    t = (min(cap, n) // align) * align
    while t > align:
        if n % t == 0:
            return t
        t -= align
    return align


def _choose_tiles(n, block_q, block_s):
    """Return (n_padded, tq, ts).  Pads n instead of emitting giant tiles."""
    if n <= max(block_q, block_s):
        # single tile on both axes; every block dim equals the full array dim
        return n, n, n
    n_pad = _round_up(n, 128)
    tq = _largest_aligned_divisor(n_pad, block_q, 8)
    ts = _largest_aligned_divisor(n_pad, block_s, 128)
    return n_pad, tq, ts


# ----------------------------------------------------------------------------
# Kernel 1: row-tiled matmul for the fused node projections
# ----------------------------------------------------------------------------
def _matmul_kernel(x_ref, w_ref, o_ref):
    o_ref[...] = jnp.dot(x_ref[...], w_ref[...],
                         preferred_element_type=jnp.float32)


def pallas_matmul(x, w, *, block_m=512):
    M, K = x.shape
    K2, Nout = w.shape
    assert K == K2
    if M <= block_m:
        tm = M
    else:
        tm = _largest_aligned_divisor(M, block_m, 8)
        if M % tm != 0:
            tm = M
    return pl.pallas_call(
        _matmul_kernel,
        out_shape=jax.ShapeDtypeStruct((M, Nout), jnp.float32),
        grid=(M // tm,),
        in_specs=[pl.BlockSpec((tm, K), lambda i: (i, 0)),
                  pl.BlockSpec((K, Nout), lambda i: (0, 0))],
        out_specs=pl.BlockSpec((tm, Nout), lambda i: (i, 0)),
        compiler_params=pltpu.CompilerParams(
            dimension_semantics=("parallel",)),
    )(x, w)


# ----------------------------------------------------------------------------
# Kernel 2: fused edge projection + flash-style edge-softmax attention +
#           aggregation (+residual +bias)
#
#   grid = (dst_tiles, src_tiles); scratch holds the online-softmax state
#   (running max m, running denom l, output accumulator acc) per dst tile.
#   All heads are processed together: feature tiles keep the lane-dense H*D
#   last dimension; per-head logits use small (H*D, H) / (H, H*D) matrices.
# ----------------------------------------------------------------------------
def _sgat_attn_kernel(ef_ref, we_ref, fs_ref, el_ref, er_ref, adj_ref,
                      ae_ref, emat_ref, res_ref, bias_ref, o_ref,
                      m_sc, l_sc, acc_sc, *, negative_slope):
    si = pl.program_id(1)

    @pl.when(si == 0)
    def _init():
        m_sc[...] = jnp.full_like(m_sc, MASK_VALUE)
        l_sc[...] = jnp.zeros_like(l_sc)
        acc_sc[...] = jnp.zeros_like(acc_sc)

    tq, ts, fe_in = ef_ref.shape
    hd = we_ref.shape[1]
    nh = emat_ref.shape[0]

    # fused edge projection (bf16 operands, f32 accumulate on the MXU):
    #   fe[q, s, :] = edge_feat[q, s, :] @ w_edge
    ef2 = ef_ref[...].reshape(tq * ts, fe_in)
    fe = jnp.dot(ef2, we_ref[...], preferred_element_type=jnp.float32)  # (TQ*TS, HD)

    # per-head edge logit: ee[q, s, h] = sum_d fe[q, s, h*D + d] * attn_edge[h, d]
    ee = jnp.dot(fe, ae_ref[...],
                 preferred_element_type=jnp.float32).reshape(tq, ts, nh)

    e = er_ref[...] + el_ref[...] + ee     # (TQ,1,H) + (1,TS,H) + (TQ,TS,H)
    e = jnp.where(e > 0, e, negative_slope * e)            # LeakyReLU
    edge = (adj_ref[...] > 0)[:, :, None]                  # (TQ, TS, 1)
    e = jnp.where(edge, e, MASK_VALUE)                     # mask before exp

    # --- online (flash) softmax over incoming edges of each dst node ---
    m_prev = m_sc[...]                                     # (TQ, H)
    m_new = jnp.maximum(m_prev, jnp.max(e, axis=1))        # (TQ, H)
    alpha = jnp.exp(m_prev - m_new)                        # (TQ, H)
    p = jnp.exp(e - m_new[:, None, :])                     # (TQ, TS, H)
    p = jnp.where(edge, p, 0.0)        # required: keeps fully-masked tiles at 0
    l_sc[...] = alpha * l_sc[...] + jnp.sum(p, axis=1)
    m_sc[...] = m_new

    # expand per-head weights onto the H*D lane layout with a 0/1 matrix (MXU)
    emat = emat_ref[...]                                   # (H, HD)
    p_full = jnp.dot(p.reshape(tq * ts, nh), emat,
                     preferred_element_type=jnp.float32).reshape(tq, ts, hd)
    alpha_full = jnp.dot(alpha, emat,
                         preferred_element_type=jnp.float32)   # (TQ, HD)

    # fused single pass: message = a * (ft_src + ft_edge), summed over src
    fs = fs_ref[...].astype(jnp.float32)                   # (TS, HD)
    ftc = fs[None, :, :] + fe.reshape(tq, ts, hd)          # (TQ, TS, HD)
    acc_sc[...] = alpha_full * acc_sc[...] + jnp.sum(p_full * ftc, axis=1)

    @pl.when(si == pl.num_programs(1) - 1)
    def _finalize():
        l = l_sc[...]
        l = jnp.where(l > 0.0, l, 1.0)     # guard zero-in-degree / padded rows
        inv_full = jnp.dot(pl.reciprocal(l), emat_ref[...],
                           preferred_element_type=jnp.float32)  # (TQ, HD)
        o_ref[...] = (acc_sc[...] * inv_full
                      + res_ref[...].astype(jnp.float32) + bias_ref[...])


def sgat_conv_forward(feat, edge_feat_dense, adj, params, *, num_heads,
                      out_feats, negative_slope=0.2,
                      block_q=128, block_s=256, block_m=512):
    """Returns rst of shape (N, num_heads, out_feats)."""
    N, F_in = feat.shape
    Fe = edge_feat_dense.shape[-1]
    H, D = num_heads, out_feats
    HD = H * D

    # ---- tiling / padding (padded src & dst nodes are masked via adj = 0) ----
    Npad, tq, ts = _choose_tiles(N, block_q, block_s)
    if Npad != N:
        feat_p = jnp.zeros((Npad, F_in), feat.dtype).at[:N].set(feat)
        adj_p = jnp.zeros((Npad, Npad), jnp.float32).at[:N, :N].set(
            adj.astype(jnp.float32))
        ef_p = jnp.zeros((Npad, Npad, Fe), edge_feat_dense.dtype).at[
            :N, :N].set(edge_feat_dense)
    else:
        feat_p, adj_p, ef_p = feat, adj, edge_feat_dense

    # ---- one-time weight preparation (outside the hot path) ----
    emat = jnp.repeat(jnp.eye(H, dtype=jnp.float32), D, axis=1)   # (H, HD) expand
    al = params["attn_l"].reshape(HD)
    ar = params["attn_r"].reshape(HD)
    ae = params["attn_edge"].reshape(HD)
    al_mat = emat.T * al[:, None]                                 # (HD, H)
    ar_mat = emat.T * ar[:, None]
    ae_mat = emat.T * ae[:, None]

    w_fc_t = params["w_fc"].T                                     # (F_in, HD)
    w_res_t = params["w_res"].T                                   # (F_in, HD)
    w_edge_t = params["w_edge"].T                                 # (Fe, HD)
    # fused projection producing [feat_src | resval | el | er] in one matmul
    w_node = jnp.concatenate(
        [w_fc_t, w_res_t, w_fc_t @ al_mat, w_fc_t @ ar_mat], axis=1)

    # ---- Pallas projection matmul (node side only; edge proj is fused) ----
    node_out = pallas_matmul(feat_p, w_node, block_m=block_m)    # (Npad, 2HD+2H)
    fs = node_out[:, :HD].astype(jnp.bfloat16)                   # (Npad, HD)
    res = node_out[:, HD:2 * HD].astype(jnp.bfloat16)            # (Npad, HD)
    el3 = node_out[:, 2 * HD:2 * HD + H].reshape(1, Npad, H)     # el[src, h]
    er3 = node_out[:, 2 * HD + H:].reshape(Npad, 1, H)           # er[dst, h]

    # streamed tensors in bf16; logit/softmax math stays f32 in-kernel
    ef_b = ef_p.astype(jnp.bfloat16)                             # (Npad, Npad, Fe)
    w_edge_b = w_edge_t.astype(jnp.bfloat16)                     # (Fe, HD)
    adj_i8 = (adj_p > 0).astype(jnp.int8)                        # (Npad, Npad)
    bias2 = params["bias"].reshape(1, HD)

    grid = (Npad // tq, Npad // ts)
    kernel = functools.partial(_sgat_attn_kernel,
                               negative_slope=negative_slope)

    out = pl.pallas_call(
        kernel,
        out_shape=jax.ShapeDtypeStruct((Npad, HD), jnp.float32),
        grid=grid,
        in_specs=[
            pl.BlockSpec((tq, ts, Fe), lambda qi, si: (qi, si, 0)),  # edge_feat
            pl.BlockSpec((Fe, HD), lambda qi, si: (0, 0)),           # w_edge
            pl.BlockSpec((ts, HD), lambda qi, si: (si, 0)),          # fs (src rows)
            pl.BlockSpec((1, ts, H), lambda qi, si: (0, si, 0)),     # el
            pl.BlockSpec((tq, 1, H), lambda qi, si: (qi, 0, 0)),     # er
            pl.BlockSpec((tq, ts), lambda qi, si: (qi, si)),         # adj mask
            pl.BlockSpec((HD, H), lambda qi, si: (0, 0)),            # attn_edge mat
            pl.BlockSpec((H, HD), lambda qi, si: (0, 0)),            # head expander
            pl.BlockSpec((tq, HD), lambda qi, si: (qi, 0)),          # residual
            pl.BlockSpec((1, HD), lambda qi, si: (0, 0)),            # bias
        ],
        out_specs=pl.BlockSpec((tq, HD), lambda qi, si: (qi, 0)),
        scratch_shapes=[
            pltpu.VMEM((tq, H), jnp.float32),    # running max
            pltpu.VMEM((tq, H), jnp.float32),    # running denom
            pltpu.VMEM((tq, HD), jnp.float32),   # output accumulator
        ],
        compiler_params=pltpu.CompilerParams(
            dimension_semantics=("parallel", "arbitrary"),
            vmem_limit_bytes=64 * 1024 * 1024),
    )(ef_b, w_edge_b, fs, el3, er3, adj_i8, ae_mat, emat, res, bias2)

    return out[:N].reshape(N, H, D)


# ----------------------------------------------------------------------------
# Pure-JAX reference (same dense formulation) for a correctness check
# ----------------------------------------------------------------------------
def sgat_ref(feat, edge_feat_dense, adj, params, *, num_heads, out_feats,
             negative_slope=0.2):
    N = feat.shape[0]
    H, D = num_heads, out_feats
    feat_src = (feat @ params["w_fc"].T).reshape(N, H, D)
    feat_edge = (edge_feat_dense.reshape(N * N, -1)
                 @ params["w_edge"].T).reshape(N, N, H, D)
    el = (feat_src * params["attn_l"]).sum(-1)                 # (N, H)
    er = (feat_src * params["attn_r"]).sum(-1)                 # (N, H)
    ee = (feat_edge * params["attn_edge"][None]).sum(-1)       # (N, N, H)
    e = er[:, None, :] + el[None, :, :] + ee                   # (Nd, Ns, H)
    e = jnp.where(e > 0, e, negative_slope * e)
    mask = (adj > 0)[:, :, None]
    e = jnp.where(mask, e, -jnp.inf)
    a = jax.nn.softmax(e, axis=1)
    a = jnp.where(mask, a, 0.0)
    ftc = feat_src[None, :, :, :] + feat_edge                  # (Nd, Ns, H, D)
    rst = (a[..., None] * ftc).sum(axis=1)                     # (Nd, H, D)
    rst = rst + (feat @ params["w_res"].T).reshape(N, H, D)
    rst = rst + params["bias"].reshape(1, H, D)
    return rst


# ----------------------------------------------------------------------------
# Deterministic parameter init (xavier_normal with gain('relu') = sqrt(2))
# ----------------------------------------------------------------------------
def init_params(key, in_feats, edge_feats, num_heads, out_feats):
    gain = jnp.sqrt(2.0)
    H, D = num_heads, out_feats
    ks = jax.random.split(key, 6)

    def xavier(k, shape, fan_in, fan_out):
        std = gain * jnp.sqrt(2.0 / (fan_in + fan_out))
        return jax.random.normal(k, shape, jnp.float32) * std

    return {
        "w_fc":      xavier(ks[0], (H * D, in_feats), in_feats, H * D),
        "w_edge":    xavier(ks[1], (H * D, edge_feats), edge_feats, H * D),
        "w_res":     xavier(ks[2], (H * D, in_feats), in_feats, H * D),
        "attn_l":    xavier(ks[3], (1, H, D), H * D, D),
        "attn_r":    xavier(ks[4], (1, H, D), H * D, D),
        "attn_edge": xavier(ks[5], (1, H, D), H * D, D),
        "bias":      jnp.zeros((H * D,), jnp.float32),
    }


if __name__ == "__main__":
    # small synthetic problem
    N, F_IN, F_E, H, D = 8, 16, 8, 4, 8
    key = jax.random.PRNGKey(0)
    k_feat, k_edge, k_params = jax.random.split(key, 3)

    feat = jax.random.normal(k_feat, (N, F_IN), jnp.float32)
    edge_feat = jax.random.normal(k_edge, (N, N, F_E), jnp.float32)

    # ring graph + self loops -> every node has in-degree >= 1
    eye = jnp.eye(N, dtype=jnp.float32)
    ring = jnp.roll(eye, shift=1, axis=1)     # edge (d+1) -> d
    adj = jnp.clip(eye + ring, 0.0, 1.0)      # (N_dst, N_src)

    params = init_params(k_params, F_IN, F_E, H, D)

    out = sgat_conv_forward(feat, edge_feat, adj, params,
                            num_heads=H, out_feats=D, negative_slope=0.2)
    out = jax.block_until_ready(out)

    ref = sgat_ref(feat, edge_feat, adj, params,
                   num_heads=H, out_feats=D, negative_slope=0.2)
    assert out.shape == (N, H, D)
    # tolerance accounts for the bf16 storage of the streamed tensors
    assert jnp.allclose(out, ref, rtol=3e-2, atol=3e-2), "mismatch vs reference"

    print("KERNEL_OK")
</pallas_src>

<mosaic_0001>
module attributes {stable_mosaic.version = 11 : i64} {
  func.func @_matmul_kernel(%arg0: i32, %arg1: memref<8x16xf32, #tpu.memory_space<vmem>>, %arg2: memref<16x72xf32, #tpu.memory_space<vmem>>, %arg3: memref<8x72xf32, #tpu.memory_space<vmem>>) attributes {dimension_semantics = [#tpu.dimension_semantics<parallel>], iteration_bounds = array<i64: 1>, scalar_prefetch = 0 : i64, scratch_operands = 0 : i64, tpu.core_type = #tpu.core_type<tc>, window_params = [{transform_indices = @transform_0, window_bounds = array<i64: 8, 16>}, {pipeline_mode = #tpu.pipeline_mode<synchronous>, transform_indices = @transform_1, window_bounds = array<i64: 16, 72>}, {transform_indices = @transform_2, window_bounds = array<i64: 8, 72>}]} {
    %c0 = arith.constant 0 : index
    %c0_0 = arith.constant 0 : index
    %0 = vector.load %arg1[%c0, %c0_0] : memref<8x16xf32, #tpu.memory_space<vmem>>, vector<8x16xf32>
    %c0_1 = arith.constant 0 : index
    %c0_2 = arith.constant 0 : index
    %1 = vector.load %arg2[%c0_1, %c0_2] : memref<16x72xf32, #tpu.memory_space<vmem>>, vector<16x72xf32>
    %cst = arith.constant dense<0.000000e+00> : vector<8x72xf32>
    %2 = tpu.matmul %0, %1, %cst {dimension_numbers = #tpu.dot_dimension_numbers<[1], [0], [0], [1], [0, 0, 1, 1], [], []>} : vector<8x16xf32>, vector<16x72xf32>, vector<8x72xf32> -> vector<8x72xf32>
    %c0_3 = arith.constant 0 : index
    %c0_4 = arith.constant 0 : index
    %3 = vector.load %arg3[%c0_3, %c0_4] : memref<8x72xf32, #tpu.memory_space<vmem>>, vector<8x72xf32>
    tpu.vector_store %arg3[%c0_3, %c0_4], %2 {strides = array<i32>} : memref<8x72xf32, #tpu.memory_space<vmem>>, vector<8x72xf32>,
    return
  }
  func.func @transform_0(%arg0: i32) -> (i32, i32) {
    %c0_i32 = arith.constant 0 : i32
    %c0_i32_0 = arith.constant 0 : i32
    return %arg0, %c0_i32 : i32, i32
  }
  func.func @transform_1(%arg0: i32) -> (i32, i32) {
    %c0_i32 = arith.constant 0 : i32
    %c0_i32_0 = arith.constant 0 : i32
    %c0_i32_1 = arith.constant 0 : i32
    return %c0_i32, %c0_i32_0 : i32, i32
  }
  func.func @transform_2(%arg0: i32) -> (i32, i32) {
    %c0_i32 = arith.constant 0 : i32
    %c0_i32_0 = arith.constant 0 : i32
    return %arg0, %c0_i32 : i32, i32
  }
}

</mosaic_0001>

<bundles_post_ra>
// kernel: tpu_custom_call.1
= control target key start
LH: loop header
LB: loop body
LE: loop exit
PB: predicated region body
PF: predicated region fallthrough
CT: control target
= control target key end

     0   :  { %7 = vsyncpa [#allocation3], 0  ;;  %s248_s0 = inlined_call_operand.hbm [shape: f32[8,16], index: 0, kind: input, shape index: {}]   ;;  %s249_s1 = inlined_call_operand.hbm [shape: f32[16,72], index: 1, kind: input, shape index: {}]   ;;  %s250_s2 = inlined_call_operand.hbm [shape: f32[8,72], index: 2, kind: output, shape index: {}]  }
   0x1   :  { %8 = vsyncpa [#allocation6], 0 }
   0x2   :  { %9 = vsyncpa [#allocation4], 0  ;;  %s217_s9 = smov [#allocation2]   ;;  %s218_s11 = smov [#allocation5]  }
   0x3   :  { %s16_s10 = sshll.u32 %s217_s9, 4  ;;  %s25_s12 = sshll.u32 %s218_s11, 4  ;;  %s17_s10 = int_to_ptr.vmem [resolvable:$true] %s16_s10  ;;  %s26_s12 = int_to_ptr.vmem [resolvable:$true] %s25_s12 }
   0x4   :  { %s159_s13 = scalar_lea.vmem %s17_s10, 128  ;;  %p164_p1 = scmp.lt.s32.totalorder %s17_s10, %s17_s10 }
   0x5   :  { %p160_p0 = scmp.ne.s32.totalorder %s17_s10, %s159_s13  ;;  %p165_p2 = scmp.lt.s32.totalorder %s159_s13, %s159_s13 }
   0x7   :  { %p166_p3 = por %p165_p2, %p164_p1 }
   0x9   :  { %p167_p4 = pnand %p166_p3, %p160_p0 }
   0xb   :  { %170 = shalt.err (!%p167_p4)
}
   0xc   :  { %19 = dma.hbm_to_vmem [thread:$0]  %s248_s0, 128, %s17_s10, [#allocation3]  }
   0xd   :  { %s179_s16 = scalar_lea.vmem %s26_s12, 256  ;;  %p184_p6 = scmp.lt.s32.totalorder %s26_s12, %s26_s12 }
   0xe   :  { %p180_p5 = scmp.ne.s32.totalorder %s26_s12, %s179_s16  ;;  %p185_p7 = scmp.lt.s32.totalorder %s179_s16, %s179_s16 }
  0x10   :  { %p186_p8 = por %p185_p7, %p184_p6 }
  0x12   :  { %p187_p9 = pnand %p186_p8, %p180_p5 }
  0x14   :  { %190 = shalt.err (!%p187_p9)
}
  0x15   :  { %s219_s17 = smov 128   ;;  %s220_s18 = smov 8  }
  0x16   :  { %31 = dma.hbm_to_vmem [thread:$0]  %s249_s1, 256, %s26_s12, [#allocation6], %s219_s17, %s219_s17, %s220_s18  }
  0x17   :  { %211 = dma.done.wait [#allocation3], 128  }
  0x18   :  { %212 = vsyncadd [#allocation3], 4294967168 }
  0x19   :  { %213 = dma.done.wait [#allocation6], 256  }
  0x1a   :  { %214 = vsyncadd [#allocation6], 4294967040  ;;  %v221_v0 = vmov 0.0   ;;  %vm222_vm0 = vmmov 0   ;;  %v40_v1 = vld [vmem:[#allocation5 + $0x8] sm:$0xff]  ;;  %v39_v2 = vld [vmem:[#allocation5] sm:$0xff] }
  0x1b   :  { %137 = vmatprep.subr.mxu0 %v221_v0  ;;  %141 = vmatprep.mubr.msk.f32.mxu0 %vm222_vm0, %v221_v0  ;;  %v38_v3 = vld [vmem:[#allocation2] sm:$0xff]  ;;  %vm41_vm1 = vcmask 130048   ;;  %s223_s0 = smov [#allocation7]   ;;  %vm115_vm2 = vcmask 588800  }
  0x1c   :  { %138 = vmatpush3.msra.mxu0 %v40_v1  ;;  %s123_s21 = sshll.u32 %s223_s0, 4  ;;  %s124_s21 = int_to_ptr.vmem [resolvable:$true] %s123_s21 }
  0x1d   :  { %139 = vmatprep.subr.mxu0 %v221_v0  ;;  %s191_s1 = scalar_lea.vmem %s124_s21, 128  ;;  %p196_p11 = scmp.lt.s32.totalorder %s124_s21, %s124_s21 }
  0x1e   :  { %140 = vmatpush3.msra.mxu0 %v39_v2  ;;  %p192_p10 = scmp.ne.s32.totalorder %s124_s21, %s191_s1  ;;  %p197_p12 = scmp.lt.s32.totalorder %s191_s1, %s191_s1 }
  0x1f   :  { %142 = vmatmul.mubr.msk.f32.vlgmr.msra.gmra.mxu0 %vm41_vm1, %v38_v3 }
  0x20   :  { %p198_p13 = por %p197_p12, %p196_p11 }
  0x22   :  { %p199_p0 = pnand %p198_p13, %p192_p10 }
  0xdf   :  { %v111_v4 = vpop.f32.mrf.mxu0 }
  0xe0   :  { %116 = vst.msk [vmem:[#allocation7] sm:$0xff] %vm115_vm2, %v111_v4 }
  0xe1   :  { %v143_v5 = vpop.f32.mrf.mxu0 }
  0xe2   :  { %202 = shalt.err (!%p199_p0)
}
  0xe3   :  { %126 = dma.vmem_to_hbm [thread:$0]  %s124_s21, 128, %s250_s2, [#allocation4]  }
  0xe4   :  { %215 = dma.done.wait [#allocation4], 128  }
  0xe5   :  { %216 = vsyncadd [#allocation4], 4294967168 }
  0xe6   :  { %130 = vsyncpa [#allocation3], 1 }
  0xe7   :  { %131 = vsyncpa [#allocation6], 1 }
  0xe8   :  { %132 = vsyncpa [#allocation4], 1 }

</bundles_post_ra>
